<compile_context>
chip_gen: v7x
topology: tpu7x:2x2x1
jax: 0.10.0
libtpu: 0.0.40
codegen_flags: <defaults>
</compile_context>

<pallas_src>
import functools

import numpy as np
import jax
import jax.numpy as jnp
from jax.experimental import pallas as pl
from jax.experimental.pallas import tpu as pltpu


# (dy, dx) for the 9 taps of a 3x3 conv, k = ky*3 + kx ordering.
_TAPS = [(ky - 1, kx - 1) for ky in range(3) for kx in range(3)]


def _build_tap_masks(Hp, Wp):
    """(9, 1, Hp*Wp) 0/1 masks; mask[k, 0, y*Wp+x] = 1 iff (y+dy, x+dx) in bounds."""
    ys, xs = np.divmod(np.arange(Hp * Wp), Wp)
    m = np.zeros((9, 1, Hp * Wp), np.float32)
    for k, (dy, dx) in enumerate(_TAPS):
        valid = (ys + dy >= 0) & (ys + dy < Hp) & (xs + dx >= 0) & (xs + dx < Wp)
        m[k, 0, :] = valid.astype(np.float32)
    return m


def _leaky_relu(v):
    return jnp.where(v > 0, v, 0.2 * v)


def _conv3x3_taps(a, masks_ref, wp):
    """a: (C, Hp*Wp) bf16 -> (9*C, Hp*Wp) bf16 concat of the 9 zero-padded taps.

    A shift by (dy, dx) on the 2D image is a shift by dy*Wp+dx on the
    flattened (lane) axis; row-wrap / out-of-image positions are zeroed by the
    precomputed per-tap masks.  Pure slice/VPU work — no MXU, no dense S.
    """
    c, hpwp = a.shape
    pad = wp + 1                                       # covers max |dy*Wp + dx|
    zeros = jnp.zeros((c, pad), a.dtype)
    ap = jnp.concatenate([zeros, a, zeros], axis=1)    # (C, Hp*Wp + 2*pad)
    taps = []
    for k, (dy, dx) in enumerate(_TAPS):
        off = pad + dy * wp + dx                       # static offset
        shifted = ap[:, off:off + hpwp]                # static lane slice
        taps.append(shifted * masks_ref[k])            # (C,HpWp) * (1,HpWp)
    return jnp.concatenate(taps, axis=0)               # (9*C, Hp*Wp)


def down_kernel(x_ref, w1_ref, b1_ref, w2_ref, b2_ref, m_ref, o_ref, *, wp):
    # x_ref : (B, Cin, HpWp)   bf16, pooled activations, spatial on lanes
    # w1_ref: (Cout, 9*Cin)    bf16
    # b1_ref: (Cout, 1)        f32
    # w2_ref: (Cout, 9*Cout)   bf16
    # b2_ref: (Cout, 1)        f32
    # m_ref : (9, 1, HpWp)     bf16 boundary masks
    # o_ref : (B, Cout, HpWp)  f32
    b_blk = x_ref.shape[0]
    for b in range(b_blk):                             # small, unrolled
        x = x_ref[b]                                   # (Cin, HpWp) bf16
        # conv1: one fused matmul over all 9 taps
        xcat = _conv3x3_taps(x, m_ref, wp)             # (9*Cin, HpWp)
        h1 = jnp.dot(w1_ref[...], xcat, preferred_element_type=jnp.float32)
        h1 = _leaky_relu(h1 + b1_ref[...])             # (Cout, HpWp) f32
        # conv2
        hcat = _conv3x3_taps(h1.astype(x.dtype), m_ref, wp)   # (9*Cout, HpWp)
        h2 = jnp.dot(w2_ref[...], hcat, preferred_element_type=jnp.float32)
        o_ref[b] = _leaky_relu(h2 + b2_ref[...]).astype(o_ref.dtype)


def _pick_batch_block(n, cap=8):
    for b in range(min(n, cap), 0, -1):
        if n % b == 0:
            return b
    return 1


def down_pallas(x_nchw, w1, b1, w2, b2):
    """x_nchw: (N, Cin, H, W); w1: (Cout, Cin, 3, 3); w2: (Cout, Cout, 3, 3)."""
    N, Cin, H, W = x_nchw.shape
    Cout = w1.shape[0]
    assert H % 2 == 0 and W % 2 == 0, "AvgPool2d(2) path assumes even H, W"
    Hp, Wp = H // 2, W // 2
    HpWp = Hp * Wp

    # ---- wrapper glue (no transposes, only reshapes + a tiny pool) --------
    # 2x2 average pool (VPU-trivial), then flatten spatial onto the lane axis.
    pooled = x_nchw.reshape(N, Cin, Hp, 2, Wp, 2).mean(axis=(3, 5))   # f32
    x_in = pooled.reshape(N, Cin, HpWp).astype(jnp.bfloat16)

    # Per-tap weights packed for one fused matmul per conv:
    #   W[o, k*Cin + c] = w[o, c, ky, kx],  k = ky*3 + kx.
    w1_mat = jnp.transpose(w1, (0, 2, 3, 1)).reshape(Cout, 9 * Cin).astype(jnp.bfloat16)
    w2_mat = jnp.transpose(w2, (0, 2, 3, 1)).reshape(Cout, 9 * Cout).astype(jnp.bfloat16)
    b1_col = b1.reshape(Cout, 1).astype(jnp.float32)
    b2_col = b2.reshape(Cout, 1).astype(jnp.float32)
    masks = jnp.asarray(_build_tap_masks(Hp, Wp), jnp.bfloat16)       # (9,1,HpWp)

    B = _pick_batch_block(N)
    kernel = functools.partial(down_kernel, wp=Wp)

    out_flat = pl.pallas_call(
        kernel,
        out_shape=jax.ShapeDtypeStruct((N, Cout, HpWp), jnp.float32),
        grid_spec=pltpu.PrefetchScalarGridSpec(
            num_scalar_prefetch=0,
            grid=(N // B,),
            in_specs=[
                pl.BlockSpec((B, Cin, HpWp), lambda n: (n, 0, 0)),
                pl.BlockSpec((Cout, 9 * Cin), lambda n: (0, 0)),
                pl.BlockSpec((Cout, 1), lambda n: (0, 0)),
                pl.BlockSpec((Cout, 9 * Cout), lambda n: (0, 0)),
                pl.BlockSpec((Cout, 1), lambda n: (0, 0)),
                pl.BlockSpec((9, 1, HpWp), lambda n: (0, 0, 0)),
            ],
            out_specs=pl.BlockSpec((B, Cout, HpWp), lambda n: (n, 0, 0)),
        ),
        compiler_params=pltpu.CompilerParams(
            dimension_semantics=("parallel",)),
    )(x_in, w1_mat, b1_col, w2_mat, b2_col, masks)

    # Free reshape back to NCHW (no transpose needed with this layout).
    return out_flat.reshape(N, Cout, Hp, Wp)


def down_reference(x_nchw, w1, b1, w2, b2):
    """Pure-JAX reference for correctness."""
    p = jax.lax.reduce_window(x_nchw, 0.0, jax.lax.add,
                              (1, 1, 2, 2), (1, 1, 2, 2), 'VALID') / 4.0

    def conv(x, w, b):
        y = jax.lax.conv_general_dilated(
            x, w, (1, 1), ((1, 1), (1, 1)),
            dimension_numbers=('NCHW', 'OIHW', 'NCHW'))
        return y + b[None, :, None, None]

    h = conv(p, w1, b1)
    h = jnp.where(h > 0, h, 0.2 * h)
    h = conv(h, w2, b2)
    return jnp.where(h > 0, h, 0.2 * h)


if __name__ == "__main__":
    N, Cin, Cout, H, W = 2, 4, 8, 16, 16

    key = jax.random.PRNGKey(0)
    kx, kw1, kb1, kw2, kb2 = jax.random.split(key, 5)
    x = jax.random.normal(kx, (N, Cin, H, W), jnp.float32)
    w1 = 0.1 * jax.random.normal(kw1, (Cout, Cin, 3, 3), jnp.float32)
    b1 = 0.1 * jax.random.normal(kb1, (Cout,), jnp.float32)
    w2 = 0.1 * jax.random.normal(kw2, (Cout, Cout, 3, 3), jnp.float32)
    b2 = 0.1 * jax.random.normal(kb2, (Cout,), jnp.float32)

    out = jax.block_until_ready(down_pallas(x, w1, b1, w2, b2))
    ref = jax.block_until_ready(down_reference(x, w1, b1, w2, b2))

    assert out.shape == (N, Cout, H // 2, W // 2), out.shape
    np.testing.assert_allclose(np.asarray(out), np.asarray(ref), rtol=2e-2, atol=2e-2)
    print("KERNEL_OK")
</pallas_src>

<mosaic_0001>
module attributes {stable_mosaic.version = 11 : i64} {
  func.func @down_kernel(%arg0: i32, %arg1: memref<2x4x64xbf16, #tpu.memory_space<vmem>>, %arg2: memref<8x36xbf16, #tpu.memory_space<vmem>>, %arg3: memref<8x1xf32, #tpu.memory_space<vmem>>, %arg4: memref<8x72xbf16, #tpu.memory_space<vmem>>, %arg5: memref<8x1xf32, #tpu.memory_space<vmem>>, %arg6: memref<9x1x64xbf16, #tpu.memory_space<vmem>>, %arg7: memref<2x8x64xf32, #tpu.memory_space<vmem>>) attributes {dimension_semantics = [#tpu.dimension_semantics<parallel>], iteration_bounds = array<i64: 1>, scalar_prefetch = 0 : i64, scratch_operands = 0 : i64, tpu.core_type = #tpu.core_type<tc>, window_params = [{transform_indices = @transform_0, window_bounds = array<i64: 2, 4, 64>}, {pipeline_mode = #tpu.pipeline_mode<synchronous>, transform_indices = @transform_1, window_bounds = array<i64: 8, 36>}, {pipeline_mode = #tpu.pipeline_mode<synchronous>, transform_indices = @transform_2, window_bounds = array<i64: 8, 1>}, {pipeline_mode = #tpu.pipeline_mode<synchronous>, transform_indices = @transform_3, window_bounds = array<i64: 8, 72>}, {pipeline_mode = #tpu.pipeline_mode<synchronous>, transform_indices = @transform_4, window_bounds = array<i64: 8, 1>}, {pipeline_mode = #tpu.pipeline_mode<synchronous>, transform_indices = @transform_5, window_bounds = array<i64: 9, 1, 64>}, {transform_indices = @transform_6, window_bounds = array<i64: 2, 8, 64>}]} {
    %c0 = arith.constant 0 : index
    %c0_0 = arith.constant 0 : index
    %c0_1 = arith.constant 0 : index
    %0 = vector.load %arg1[%c0, %c0_0, %c0_1] : memref<2x4x64xbf16, #tpu.memory_space<vmem>>, vector<1x4x64xbf16>
    %1 = vector.shape_cast %0 : vector<1x4x64xbf16> to vector<4x64xbf16>
    %cst = arith.constant 0.000000e+00 : bf16
    %2 = vector.broadcast %cst : bf16 to vector<4x9xbf16>
    %3 = tpu.concatenate %2, %1, %2 in 1 : vector<4x9xbf16>, vector<4x64xbf16>, vector<4x9xbf16> -> vector<4x82xbf16>
    %4 = vector.extract_strided_slice %3 {offsets = [0, 0], sizes = [4, 64], strides = [1, 1]} : vector<4x82xbf16> to vector<4x64xbf16>
    %c0_2 = arith.constant 0 : index
    %c0_3 = arith.constant 0 : index
    %c0_4 = arith.constant 0 : index
    %5 = vector.load %arg6[%c0_2, %c0_3, %c0_4] : memref<9x1x64xbf16, #tpu.memory_space<vmem>>, vector<1x1x64xbf16>
    %6 = vector.shape_cast %5 : vector<1x1x64xbf16> to vector<1x64xbf16>
    %7 = vector.broadcast %6 : vector<1x64xbf16> to vector<4x64xbf16>
    %8 = arith.mulf %4, %7 : vector<4x64xbf16>
    %9 = vector.extract_strided_slice %3 {offsets = [0, 1], sizes = [4, 64], strides = [1, 1]} : vector<4x82xbf16> to vector<4x64xbf16>
    %c1 = arith.constant 1 : index
    %c0_5 = arith.constant 0 : index
    %c0_6 = arith.constant 0 : index
    %10 = vector.load %arg6[%c1, %c0_5, %c0_6] : memref<9x1x64xbf16, #tpu.memory_space<vmem>>, vector<1x1x64xbf16>
    %11 = vector.shape_cast %10 : vector<1x1x64xbf16> to vector<1x64xbf16>
    %12 = vector.broadcast %11 : vector<1x64xbf16> to vector<4x64xbf16>
    %13 = arith.mulf %9, %12 : vector<4x64xbf16>
    %14 = vector.extract_strided_slice %3 {offsets = [0, 2], sizes = [4, 64], strides = [1, 1]} : vector<4x82xbf16> to vector<4x64xbf16>
    %c2 = arith.constant 2 : index
    %c0_7 = arith.constant 0 : index
    %c0_8 = arith.constant 0 : index
    %15 = vector.load %arg6[%c2, %c0_7, %c0_8] : memref<9x1x64xbf16, #tpu.memory_space<vmem>>, vector<1x1x64xbf16>
    %16 = vector.shape_cast %15 : vector<1x1x64xbf16> to vector<1x64xbf16>
    %17 = vector.broadcast %16 : vector<1x64xbf16> to vector<4x64xbf16>
    %18 = arith.mulf %14, %17 : vector<4x64xbf16>
    %19 = vector.extract_strided_slice %3 {offsets = [0, 8], sizes = [4, 64], strides = [1, 1]} : vector<4x82xbf16> to vector<4x64xbf16>
    %c3 = arith.constant 3 : index
    %c0_9 = arith.constant 0 : index
    %c0_10 = arith.constant 0 : index
    %20 = vector.load %arg6[%c3, %c0_9, %c0_10] : memref<9x1x64xbf16, #tpu.memory_space<vmem>>, vector<1x1x64xbf16>
    %21 = vector.shape_cast %20 : vector<1x1x64xbf16> to vector<1x64xbf16>
    %22 = vector.broadcast %21 : vector<1x64xbf16> to vector<4x64xbf16>
    %23 = arith.mulf %19, %22 : vector<4x64xbf16>
    %24 = vector.extract_strided_slice %3 {offsets = [0, 9], sizes = [4, 64], strides = [1, 1]} : vector<4x82xbf16> to vector<4x64xbf16>
    %c4 = arith.constant 4 : index
    %c0_11 = arith.constant 0 : index
    %c0_12 = arith.constant 0 : index
    %25 = vector.load %arg6[%c4, %c0_11, %c0_12] : memref<9x1x64xbf16, #tpu.memory_space<vmem>>, vector<1x1x64xbf16>
    %26 = vector.shape_cast %25 : vector<1x1x64xbf16> to vector<1x64xbf16>
    %27 = vector.broadcast %26 : vector<1x64xbf16> to vector<4x64xbf16>
    %28 = arith.mulf %24, %27 : vector<4x64xbf16>
    %29 = vector.extract_strided_slice %3 {offsets = [0, 10], sizes = [4, 64], strides = [1, 1]} : vector<4x82xbf16> to vector<4x64xbf16>
    %c5 = arith.constant 5 : index
    %c0_13 = arith.constant 0 : index
    %c0_14 = arith.constant 0 : index
    %30 = vector.load %arg6[%c5, %c0_13, %c0_14] : memref<9x1x64xbf16, #tpu.memory_space<vmem>>, vector<1x1x64xbf16>
    %31 = vector.shape_cast %30 : vector<1x1x64xbf16> to vector<1x64xbf16>
    %32 = vector.broadcast %31 : vector<1x64xbf16> to vector<4x64xbf16>
    %33 = arith.mulf %29, %32 : vector<4x64xbf16>
    %34 = vector.extract_strided_slice %3 {offsets = [0, 16], sizes = [4, 64], strides = [1, 1]} : vector<4x82xbf16> to vector<4x64xbf16>
    %c6 = arith.constant 6 : index
    %c0_15 = arith.constant 0 : index
    %c0_16 = arith.constant 0 : index
    %35 = vector.load %arg6[%c6, %c0_15, %c0_16] : memref<9x1x64xbf16, #tpu.memory_space<vmem>>, vector<1x1x64xbf16>
    %36 = vector.shape_cast %35 : vector<1x1x64xbf16> to vector<1x64xbf16>
    %37 = vector.broadcast %36 : vector<1x64xbf16> to vector<4x64xbf16>
    %38 = arith.mulf %34, %37 : vector<4x64xbf16>
    %39 = vector.extract_strided_slice %3 {offsets = [0, 17], sizes = [4, 64], strides = [1, 1]} : vector<4x82xbf16> to vector<4x64xbf16>
    %c7 = arith.constant 7 : index
    %c0_17 = arith.constant 0 : index
    %c0_18 = arith.constant 0 : index
    %40 = vector.load %arg6[%c7, %c0_17, %c0_18] : memref<9x1x64xbf16, #tpu.memory_space<vmem>>, vector<1x1x64xbf16>
    %41 = vector.shape_cast %40 : vector<1x1x64xbf16> to vector<1x64xbf16>
    %42 = vector.broadcast %41 : vector<1x64xbf16> to vector<4x64xbf16>
    %43 = arith.mulf %39, %42 : vector<4x64xbf16>
    %44 = vector.extract_strided_slice %3 {offsets = [0, 18], sizes = [4, 64], strides = [1, 1]} : vector<4x82xbf16> to vector<4x64xbf16>
    %c8 = arith.constant 8 : index
    %c0_19 = arith.constant 0 : index
    %c0_20 = arith.constant 0 : index
    %45 = vector.load %arg6[%c8, %c0_19, %c0_20] : memref<9x1x64xbf16, #tpu.memory_space<vmem>>, vector<1x1x64xbf16>
    %46 = vector.shape_cast %45 : vector<1x1x64xbf16> to vector<1x64xbf16>
    %47 = vector.broadcast %46 : vector<1x64xbf16> to vector<4x64xbf16>
    %48 = arith.mulf %44, %47 : vector<4x64xbf16>
    %49 = tpu.concatenate %8, %13, %18, %23, %28, %33, %38, %43, %48 in 0 : vector<4x64xbf16>, vector<4x64xbf16>, vector<4x64xbf16>, vector<4x64xbf16>, vector<4x64xbf16>, vector<4x64xbf16>, vector<4x64xbf16>, vector<4x64xbf16>, vector<4x64xbf16> -> vector<36x64xbf16>
    %c0_21 = arith.constant 0 : index
    %c0_22 = arith.constant 0 : index
    %50 = vector.load %arg2[%c0_21, %c0_22] : memref<8x36xbf16, #tpu.memory_space<vmem>>, vector<8x36xbf16>
    %cst_23 = arith.constant dense<0.000000e+00> : vector<8x64xf32>
    %51 = tpu.matmul %50, %49, %cst_23 {dimension_numbers = #tpu.dot_dimension_numbers<[1], [0], [0], [1], [0, 0, 1, 1], [], []>} : vector<8x36xbf16>, vector<36x64xbf16>, vector<8x64xf32> -> vector<8x64xf32>
    %c0_24 = arith.constant 0 : index
    %c0_25 = arith.constant 0 : index
    %52 = vector.load %arg3[%c0_24, %c0_25] : memref<8x1xf32, #tpu.memory_space<vmem>>, vector<8x1xf32>
    %53 = vector.broadcast %52 : vector<8x1xf32> to vector<8x64xf32>
    %54 = arith.addf %51, %53 : vector<8x64xf32>
    %cst_26 = arith.constant 0.000000e+00 : f32
    %55 = vector.broadcast %cst_26 : f32 to vector<8x64xf32>
    %56 = arith.cmpf ogt, %54, %55 : vector<8x64xf32>
    %cst_27 = arith.constant 2.000000e-01 : f32
    %57 = vector.broadcast %cst_27 : f32 to vector<8x64xf32>
    %58 = arith.mulf %57, %54 : vector<8x64xf32>
    %59 = arith.select %56, %54, %58 : vector<8x64xi1>, vector<8x64xf32>
    %60 = arith.truncf %59 : vector<8x64xf32> to vector<8x64xbf16>
    %cst_28 = arith.constant 0.000000e+00 : bf16
    %61 = vector.broadcast %cst_28 : bf16 to vector<8x9xbf16>
    %62 = tpu.concatenate %61, %60, %61 in 1 : vector<8x9xbf16>, vector<8x64xbf16>, vector<8x9xbf16> -> vector<8x82xbf16>
    %63 = vector.extract_strided_slice %62 {offsets = [0, 0], sizes = [8, 64], strides = [1, 1]} : vector<8x82xbf16> to vector<8x64xbf16>
    %c0_29 = arith.constant 0 : index
    %c0_30 = arith.constant 0 : index
    %c0_31 = arith.constant 0 : index
    %64 = vector.load %arg6[%c0_29, %c0_30, %c0_31] : memref<9x1x64xbf16, #tpu.memory_space<vmem>>, vector<1x1x64xbf16>
    %65 = vector.shape_cast %64 : vector<1x1x64xbf16> to vector<1x64xbf16>
    %66 = vector.broadcast %65 : vector<1x64xbf16> to vector<8x64xbf16>
    %67 = arith.mulf %63, %66 : vector<8x64xbf16>
    %68 = vector.extract_strided_slice %62 {offsets = [0, 1], sizes = [8, 64], strides = [1, 1]} : vector<8x82xbf16> to vector<8x64xbf16>
    %c1_32 = arith.constant 1 : index
    %c0_33 = arith.constant 0 : index
    %c0_34 = arith.constant 0 : index
    %69 = vector.load %arg6[%c1_32, %c0_33, %c0_34] : memref<9x1x64xbf16, #tpu.memory_space<vmem>>, vector<1x1x64xbf16>
    %70 = vector.shape_cast %69 : vector<1x1x64xbf16> to vector<1x64xbf16>
    %71 = vector.broadcast %70 : vector<1x64xbf16> to vector<8x64xbf16>
    %72 = arith.mulf %68, %71 : vector<8x64xbf16>
    %73 = vector.extract_strided_slice %62 {offsets = [0, 2], sizes = [8, 64], strides = [1, 1]} : vector<8x82xbf16> to vector<8x64xbf16>
    %c2_35 = arith.constant 2 : index
    %c0_36 = arith.constant 0 : index
    %c0_37 = arith.constant 0 : index
    %74 = vector.load %arg6[%c2_35, %c0_36, %c0_37] : memref<9x1x64xbf16, #tpu.memory_space<vmem>>, vector<1x1x64xbf16>
    %75 = vector.shape_cast %74 : vector<1x1x64xbf16> to vector<1x64xbf16>
    %76 = vector.broadcast %75 : vector<1x64xbf16> to vector<8x64xbf16>
    %77 = arith.mulf %73, %76 : vector<8x64xbf16>
    %78 = vector.extract_strided_slice %62 {offsets = [0, 8], sizes = [8, 64], strides = [1, 1]} : vector<8x82xbf16> to vector<8x64xbf16>
    %c3_38 = arith.constant 3 : index
    %c0_39 = arith.constant 0 : index
    %c0_40 = arith.constant 0 : index
    %79 = vector.load %arg6[%c3_38, %c0_39, %c0_40] : memref<9x1x64xbf16, #tpu.memory_space<vmem>>, vector<1x1x64xbf16>
    %80 = vector.shape_cast %79 : vector<1x1x64xbf16> to vector<1x64xbf16>
    %81 = vector.broadcast %80 : vector<1x64xbf16> to vector<8x64xbf16>
    %82 = arith.mulf %78, %81 : vector<8x64xbf16>
    %83 = vector.extract_strided_slice %62 {offsets = [0, 9], sizes = [8, 64], strides = [1, 1]} : vector<8x82xbf16> to vector<8x64xbf16>
    %c4_41 = arith.constant 4 : index
    %c0_42 = arith.constant 0 : index
    %c0_43 = arith.constant 0 : index
    %84 = vector.load %arg6[%c4_41, %c0_42, %c0_43] : memref<9x1x64xbf16, #tpu.memory_space<vmem>>, vector<1x1x64xbf16>
    %85 = vector.shape_cast %84 : vector<1x1x64xbf16> to vector<1x64xbf16>
    %86 = vector.broadcast %85 : vector<1x64xbf16> to vector<8x64xbf16>
    %87 = arith.mulf %83, %86 : vector<8x64xbf16>
    %88 = vector.extract_strided_slice %62 {offsets = [0, 10], sizes = [8, 64], strides = [1, 1]} : vector<8x82xbf16> to vector<8x64xbf16>
    %c5_44 = arith.constant 5 : index
    %c0_45 = arith.constant 0 : index
    %c0_46 = arith.constant 0 : index
    %89 = vector.load %arg6[%c5_44, %c0_45, %c0_46] : memref<9x1x64xbf16, #tpu.memory_space<vmem>>, vector<1x1x64xbf16>
    %90 = vector.shape_cast %89 : vector<1x1x64xbf16> to vector<1x64xbf16>
    %91 = vector.broadcast %90 : vector<1x64xbf16> to vector<8x64xbf16>
    %92 = arith.mulf %88, %91 : vector<8x64xbf16>
    %93 = vector.extract_strided_slice %62 {offsets = [0, 16], sizes = [8, 64], strides = [1, 1]} : vector<8x82xbf16> to vector<8x64xbf16>
    %c6_47 = arith.constant 6 : index
    %c0_48 = arith.constant 0 : index
    %c0_49 = arith.constant 0 : index
    %94 = vector.load %arg6[%c6_47, %c0_48, %c0_49] : memref<9x1x64xbf16, #tpu.memory_space<vmem>>, vector<1x1x64xbf16>
    %95 = vector.shape_cast %94 : vector<1x1x64xbf16> to vector<1x64xbf16>
    %96 = vector.broadcast %95 : vector<1x64xbf16> to vector<8x64xbf16>
    %97 = arith.mulf %93, %96 : vector<8x64xbf16>
    %98 = vector.extract_strided_slice %62 {offsets = [0, 17], sizes = [8, 64], strides = [1, 1]} : vector<8x82xbf16> to vector<8x64xbf16>
    %c7_50 = arith.constant 7 : index
    %c0_51 = arith.constant 0 : index
    %c0_52 = arith.constant 0 : index
    %99 = vector.load %arg6[%c7_50, %c0_51, %c0_52] : memref<9x1x64xbf16, #tpu.memory_space<vmem>>, vector<1x1x64xbf16>
    %100 = vector.shape_cast %99 : vector<1x1x64xbf16> to vector<1x64xbf16>
    %101 = vector.broadcast %100 : vector<1x64xbf16> to vector<8x64xbf16>
    %102 = arith.mulf %98, %101 : vector<8x64xbf16>
    %103 = vector.extract_strided_slice %62 {offsets = [0, 18], sizes = [8, 64], strides = [1, 1]} : vector<8x82xbf16> to vector<8x64xbf16>
    %c8_53 = arith.constant 8 : index
    %c0_54 = arith.constant 0 : index
    %c0_55 = arith.constant 0 : index
    %104 = vector.load %arg6[%c8_53, %c0_54, %c0_55] : memref<9x1x64xbf16, #tpu.memory_space<vmem>>, vector<1x1x64xbf16>
    %105 = vector.shape_cast %104 : vector<1x1x64xbf16> to vector<1x64xbf16>
    %106 = vector.broadcast %105 : vector<1x64xbf16> to vector<8x64xbf16>
    %107 = arith.mulf %103, %106 : vector<8x64xbf16>
    %108 = tpu.concatenate %67, %72, %77, %82, %87, %92, %97, %102, %107 in 0 : vector<8x64xbf16>, vector<8x64xbf16>, vector<8x64xbf16>, vector<8x64xbf16>, vector<8x64xbf16>, vector<8x64xbf16>, vector<8x64xbf16>, vector<8x64xbf16>, vector<8x64xbf16> -> vector<72x64xbf16>
    %c0_56 = arith.constant 0 : index
    %c0_57 = arith.constant 0 : index
    %109 = vector.load %arg4[%c0_56, %c0_57] : memref<8x72xbf16, #tpu.memory_space<vmem>>, vector<8x72xbf16>
    %cst_58 = arith.constant dense<0.000000e+00> : vector<8x64xf32>
    %110 = tpu.matmul %109, %108, %cst_58 {dimension_numbers = #tpu.dot_dimension_numbers<[1], [0], [0], [1], [0, 0, 1, 1], [], []>} : vector<8x72xbf16>, vector<72x64xbf16>, vector<8x64xf32> -> vector<8x64xf32>
    %c0_59 = arith.constant 0 : index
    %c0_60 = arith.constant 0 : index
    %111 = vector.load %arg5[%c0_59, %c0_60] : memref<8x1xf32, #tpu.memory_space<vmem>>, vector<8x1xf32>
    %112 = vector.broadcast %111 : vector<8x1xf32> to vector<8x64xf32>
    %113 = arith.addf %110, %112 : vector<8x64xf32>
    %cst_61 = arith.constant 0.000000e+00 : f32
    %114 = vector.broadcast %cst_61 : f32 to vector<8x64xf32>
    %115 = arith.cmpf ogt, %113, %114 : vector<8x64xf32>
    %cst_62 = arith.constant 2.000000e-01 : f32
    %116 = vector.broadcast %cst_62 : f32 to vector<8x64xf32>
    %117 = arith.mulf %116, %113 : vector<8x64xf32>
    %118 = arith.select %115, %113, %117 : vector<8x64xi1>, vector<8x64xf32>
    %c0_63 = arith.constant 0 : index
    %c0_64 = arith.constant 0 : index
    %c0_65 = arith.constant 0 : index
    %119 = vector.load %arg7[%c0_63, %c0_64, %c0_65] : memref<2x8x64xf32, #tpu.memory_space<vmem>>, vector<1x8x64xf32>
    %120 = vector.shape_cast %119 : vector<1x8x64xf32> to vector<8x64xf32>
    %121 = vector.shape_cast %118 : vector<8x64xf32> to vector<1x8x64xf32>
    tpu.vector_store %arg7[%c0_63, %c0_64, %c0_65], %121 {strides = array<i32>} : memref<2x8x64xf32, #tpu.memory_space<vmem>>, vector<1x8x64xf32>,
    %c1_66 = arith.constant 1 : index
    %c0_67 = arith.constant 0 : index
    %c0_68 = arith.constant 0 : index
    %122 = vector.load %arg1[%c1_66, %c0_67, %c0_68] : memref<2x4x64xbf16, #tpu.memory_space<vmem>>, vector<1x4x64xbf16>
    %123 = vector.shape_cast %122 : vector<1x4x64xbf16> to vector<4x64xbf16>
    %cst_69 = arith.constant 0.000000e+00 : bf16
    %124 = vector.broadcast %cst_69 : bf16 to vector<4x9xbf16>
    %125 = tpu.concatenate %124, %123, %124 in 1 : vector<4x9xbf16>, vector<4x64xbf16>, vector<4x9xbf16> -> vector<4x82xbf16>
    %126 = vector.extract_strided_slice %125 {offsets = [0, 0], sizes = [4, 64], strides = [1, 1]} : vector<4x82xbf16> to vector<4x64xbf16>
    %c0_70 = arith.constant 0 : index
    %c0_71 = arith.constant 0 : index
    %c0_72 = arith.constant 0 : index
    %127 = vector.load %arg6[%c0_70, %c0_71, %c0_72] : memref<9x1x64xbf16, #tpu.memory_space<vmem>>, vector<1x1x64xbf16>
    %128 = vector.shape_cast %127 : vector<1x1x64xbf16> to vector<1x64xbf16>
    %129 = vector.broadcast %128 : vector<1x64xbf16> to vector<4x64xbf16>
    %130 = arith.mulf %126, %129 : vector<4x64xbf16>
    %131 = vector.extract_strided_slice %125 {offsets = [0, 1], sizes = [4, 64], strides = [1, 1]} : vector<4x82xbf16> to vector<4x64xbf16>
    %c1_73 = arith.constant 1 : index
    %c0_74 = arith.constant 0 : index
    %c0_75 = arith.constant 0 : index
    %132 = vector.load %arg6[%c1_73, %c0_74, %c0_75] : memref<9x1x64xbf16, #tpu.memory_space<vmem>>, vector<1x1x64xbf16>
    %133 = vector.shape_cast %132 : vector<1x1x64xbf16> to vector<1x64xbf16>
    %134 = vector.broadcast %133 : vector<1x64xbf16> to vector<4x64xbf16>
    %135 = arith.mulf %131, %134 : vector<4x64xbf16>
    %136 = vector.extract_strided_slice %125 {offsets = [0, 2], sizes = [4, 64], strides = [1, 1]} : vector<4x82xbf16> to vector<4x64xbf16>
    %c2_76 = arith.constant 2 : index
    %c0_77 = arith.constant 0 : index
    %c0_78 = arith.constant 0 : index
    %137 = vector.load %arg6[%c2_76, %c0_77, %c0_78] : memref<9x1x64xbf16, #tpu.memory_space<vmem>>, vector<1x1x64xbf16>
    %138 = vector.shape_cast %137 : vector<1x1x64xbf16> to vector<1x64xbf16>
    %139 = vector.broadcast %138 : vector<1x64xbf16> to vector<4x64xbf16>
    %140 = arith.mulf %136, %139 : vector<4x64xbf16>
    %141 = vector.extract_strided_slice %125 {offsets = [0, 8], sizes = [4, 64], strides = [1, 1]} : vector<4x82xbf16> to vector<4x64xbf16>
    %c3_79 = arith.constant 3 : index
    %c0_80 = arith.constant 0 : index
    %c0_81 = arith.constant 0 : index
    %142 = vector.load %arg6[%c3_79, %c0_80, %c0_81] : memref<9x1x64xbf16, #tpu.memory_space<vmem>>, vector<1x1x64xbf16>
    %143 = vector.shape_cast %142 : vector<1x1x64xbf16> to vector<1x64xbf16>
    %144 = vector.broadcast %143 : vector<1x64xbf16> to vector<4x64xbf16>
    %145 = arith.mulf %141, %144 : vector<4x64xbf16>
    %146 = vector.extract_strided_slice %125 {offsets = [0, 9], sizes = [4, 64], strides = [1, 1]} : vector<4x82xbf16> to vector<4x64xbf16>
    %c4_82 = arith.constant 4 : index
    %c0_83 = arith.constant 0 : index
    %c0_84 = arith.constant 0 : index
    %147 = vector.load %arg6[%c4_82, %c0_83, %c0_84] : memref<9x1x64xbf16, #tpu.memory_space<vmem>>, vector<1x1x64xbf16>
    %148 = vector.shape_cast %147 : vector<1x1x64xbf16> to vector<1x64xbf16>
    %149 = vector.broadcast %148 : vector<1x64xbf16> to vector<4x64xbf16>
    %150 = arith.mulf %146, %149 : vector<4x64xbf16>
    %151 = vector.extract_strided_slice %125 {offsets = [0, 10], sizes = [4, 64], strides = [1, 1]} : vector<4x82xbf16> to vector<4x64xbf16>
    %c5_85 = arith.constant 5 : index
    %c0_86 = arith.constant 0 : index
    %c0_87 = arith.constant 0 : index
    %152 = vector.load %arg6[%c5_85, %c0_86, %c0_87] : memref<9x1x64xbf16, #tpu.memory_space<vmem>>, vector<1x1x64xbf16>
    %153 = vector.shape_cast %152 : vector<1x1x64xbf16> to vector<1x64xbf16>
    %154 = vector.broadcast %153 : vector<1x64xbf16> to vector<4x64xbf16>
    %155 = arith.mulf %151, %154 : vector<4x64xbf16>
    %156 = vector.extract_strided_slice %125 {offsets = [0, 16], sizes = [4, 64], strides = [1, 1]} : vector<4x82xbf16> to vector<4x64xbf16>
    %c6_88 = arith.constant 6 : index
    %c0_89 = arith.constant 0 : index
    %c0_90 = arith.constant 0 : index
    %157 = vector.load %arg6[%c6_88, %c0_89, %c0_90] : memref<9x1x64xbf16, #tpu.memory_space<vmem>>, vector<1x1x64xbf16>
    %158 = vector.shape_cast %157 : vector<1x1x64xbf16> to vector<1x64xbf16>
    %159 = vector.broadcast %158 : vector<1x64xbf16> to vector<4x64xbf16>
    %160 = arith.mulf %156, %159 : vector<4x64xbf16>
    %161 = vector.extract_strided_slice %125 {offsets = [0, 17], sizes = [4, 64], strides = [1, 1]} : vector<4x82xbf16> to vector<4x64xbf16>
    %c7_91 = arith.constant 7 : index
    %c0_92 = arith.constant 0 : index
    %c0_93 = arith.constant 0 : index
    %162 = vector.load %arg6[%c7_91, %c0_92, %c0_93] : memref<9x1x64xbf16, #tpu.memory_space<vmem>>, vector<1x1x64xbf16>
    %163 = vector.shape_cast %162 : vector<1x1x64xbf16> to vector<1x64xbf16>
    %164 = vector.broadcast %163 : vector<1x64xbf16> to vector<4x64xbf16>
    %165 = arith.mulf %161, %164 : vector<4x64xbf16>
    %166 = vector.extract_strided_slice %125 {offsets = [0, 18], sizes = [4, 64], strides = [1, 1]} : vector<4x82xbf16> to vector<4x64xbf16>
    %c8_94 = arith.constant 8 : index
    %c0_95 = arith.constant 0 : index
    %c0_96 = arith.constant 0 : index
    %167 = vector.load %arg6[%c8_94, %c0_95, %c0_96] : memref<9x1x64xbf16, #tpu.memory_space<vmem>>, vector<1x1x64xbf16>
    %168 = vector.shape_cast %167 : vector<1x1x64xbf16> to vector<1x64xbf16>
    %169 = vector.broadcast %168 : vector<1x64xbf16> to vector<4x64xbf16>
    %170 = arith.mulf %166, %169 : vector<4x64xbf16>
    %171 = tpu.concatenate %130, %135, %140, %145, %150, %155, %160, %165, %170 in 0 : vector<4x64xbf16>, vector<4x64xbf16>, vector<4x64xbf16>, vector<4x64xbf16>, vector<4x64xbf16>, vector<4x64xbf16>, vector<4x64xbf16>, vector<4x64xbf16>, vector<4x64xbf16> -> vector<36x64xbf16>
    %c0_97 = arith.constant 0 : index
    %c0_98 = arith.constant 0 : index
    %172 = vector.load %arg2[%c0_97, %c0_98] : memref<8x36xbf16, #tpu.memory_space<vmem>>, vector<8x36xbf16>
    %cst_99 = arith.constant dense<0.000000e+00> : vector<8x64xf32>
    %173 = tpu.matmul %172, %171, %cst_99 {dimension_numbers = #tpu.dot_dimension_numbers<[1], [0], [0], [1], [0, 0, 1, 1], [], []>} : vector<8x36xbf16>, vector<36x64xbf16>, vector<8x64xf32> -> vector<8x64xf32>
    %c0_100 = arith.constant 0 : index
    %c0_101 = arith.constant 0 : index
    %174 = vector.load %arg3[%c0_100, %c0_101] : memref<8x1xf32, #tpu.memory_space<vmem>>, vector<8x1xf32>
    %175 = vector.broadcast %174 : vector<8x1xf32> to vector<8x64xf32>
    %176 = arith.addf %173, %175 : vector<8x64xf32>
    %cst_102 = arith.constant 0.000000e+00 : f32
    %177 = vector.broadcast %cst_102 : f32 to vector<8x64xf32>
    %178 = arith.cmpf ogt, %176, %177 : vector<8x64xf32>
    %cst_103 = arith.constant 2.000000e-01 : f32
    %179 = vector.broadcast %cst_103 : f32 to vector<8x64xf32>
    %180 = arith.mulf %179, %176 : vector<8x64xf32>
    %181 = arith.select %178, %176, %180 : vector<8x64xi1>, vector<8x64xf32>
    %182 = arith.truncf %181 : vector<8x64xf32> to vector<8x64xbf16>
    %cst_104 = arith.constant 0.000000e+00 : bf16
    %183 = vector.broadcast %cst_104 : bf16 to vector<8x9xbf16>
    %184 = tpu.concatenate %183, %182, %183 in 1 : vector<8x9xbf16>, vector<8x64xbf16>, vector<8x9xbf16> -> vector<8x82xbf16>
    %185 = vector.extract_strided_slice %184 {offsets = [0, 0], sizes = [8, 64], strides = [1, 1]} : vector<8x82xbf16> to vector<8x64xbf16>
    %c0_105 = arith.constant 0 : index
    %c0_106 = arith.constant 0 : index
    %c0_107 = arith.constant 0 : index
    %186 = vector.load %arg6[%c0_105, %c0_106, %c0_107] : memref<9x1x64xbf16, #tpu.memory_space<vmem>>, vector<1x1x64xbf16>
    %187 = vector.shape_cast %186 : vector<1x1x64xbf16> to vector<1x64xbf16>
    %188 = vector.broadcast %187 : vector<1x64xbf16> to vector<8x64xbf16>
    %189 = arith.mulf %185, %188 : vector<8x64xbf16>
    %190 = vector.extract_strided_slice %184 {offsets = [0, 1], sizes = [8, 64], strides = [1, 1]} : vector<8x82xbf16> to vector<8x64xbf16>
    %c1_108 = arith.constant 1 : index
    %c0_109 = arith.constant 0 : index
    %c0_110 = arith.constant 0 : index
    %191 = vector.load %arg6[%c1_108, %c0_109, %c0_110] : memref<9x1x64xbf16, #tpu.memory_space<vmem>>, vector<1x1x64xbf16>
    %192 = vector.shape_cast %191 : vector<1x1x64xbf16> to vector<1x64xbf16>
    %193 = vector.broadcast %192 : vector<1x64xbf16> to vector<8x64xbf16>
    %194 = arith.mulf %190, %193 : vector<8x64xbf16>
    %195 = vector.extract_strided_slice %184 {offsets = [0, 2], sizes = [8, 64], strides = [1, 1]} : vector<8x82xbf16> to vector<8x64xbf16>
    %c2_111 = arith.constant 2 : index
    %c0_112 = arith.constant 0 : index
    %c0_113 = arith.constant 0 : index
    %196 = vector.load %arg6[%c2_111, %c0_112, %c0_113] : memref<9x1x64xbf16, #tpu.memory_space<vmem>>, vector<1x1x64xbf16>
    %197 = vector.shape_cast %196 : vector<1x1x64xbf16> to vector<1x64xbf16>
    %198 = vector.broadcast %197 : vector<1x64xbf16> to vector<8x64xbf16>
    %199 = arith.mulf %195, %198 : vector<8x64xbf16>
    %200 = vector.extract_strided_slice %184 {offsets = [0, 8], sizes = [8, 64], strides = [1, 1]} : vector<8x82xbf16> to vector<8x64xbf16>
    %c3_114 = arith.constant 3 : index
    %c0_115 = arith.constant 0 : index
    %c0_116 = arith.constant 0 : index
    %201 = vector.load %arg6[%c3_114, %c0_115, %c0_116] : memref<9x1x64xbf16, #tpu.memory_space<vmem>>, vector<1x1x64xbf16>
    %202 = vector.shape_cast %201 : vector<1x1x64xbf16> to vector<1x64xbf16>
    %203 = vector.broadcast %202 : vector<1x64xbf16> to vector<8x64xbf16>
    %204 = arith.mulf %200, %203 : vector<8x64xbf16>
    %205 = vector.extract_strided_slice %184 {offsets = [0, 9], sizes = [8, 64], strides = [1, 1]} : vector<8x82xbf16> to vector<8x64xbf16>
    %c4_117 = arith.constant 4 : index
    %c0_118 = arith.constant 0 : index
    %c0_119 = arith.constant 0 : index
    %206 = vector.load %arg6[%c4_117, %c0_118, %c0_119] : memref<9x1x64xbf16, #tpu.memory_space<vmem>>, vector<1x1x64xbf16>
    %207 = vector.shape_cast %206 : vector<1x1x64xbf16> to vector<1x64xbf16>
    %208 = vector.broadcast %207 : vector<1x64xbf16> to vector<8x64xbf16>
    %209 = arith.mulf %205, %208 : vector<8x64xbf16>
    %210 = vector.extract_strided_slice %184 {offsets = [0, 10], sizes = [8, 64], strides = [1, 1]} : vector<8x82xbf16> to vector<8x64xbf16>
    %c5_120 = arith.constant 5 : index
    %c0_121 = arith.constant 0 : index
    %c0_122 = arith.constant 0 : index
    %211 = vector.load %arg6[%c5_120, %c0_121, %c0_122] : memref<9x1x64xbf16, #tpu.memory_space<vmem>>, vector<1x1x64xbf16>
    %212 = vector.shape_cast %211 : vector<1x1x64xbf16> to vector<1x64xbf16>
    %213 = vector.broadcast %212 : vector<1x64xbf16> to vector<8x64xbf16>
    %214 = arith.mulf %210, %213 : vector<8x64xbf16>
    %215 = vector.extract_strided_slice %184 {offsets = [0, 16], sizes = [8, 64], strides = [1, 1]} : vector<8x82xbf16> to vector<8x64xbf16>
    %c6_123 = arith.constant 6 : index
    %c0_124 = arith.constant 0 : index
    %c0_125 = arith.constant 0 : index
    %216 = vector.load %arg6[%c6_123, %c0_124, %c0_125] : memref<9x1x64xbf16, #tpu.memory_space<vmem>>, vector<1x1x64xbf16>
    %217 = vector.shape_cast %216 : vector<1x1x64xbf16> to vector<1x64xbf16>
    %218 = vector.broadcast %217 : vector<1x64xbf16> to vector<8x64xbf16>
    %219 = arith.mulf %215, %218 : vector<8x64xbf16>
    %220 = vector.extract_strided_slice %184 {offsets = [0, 17], sizes = [8, 64], strides = [1, 1]} : vector<8x82xbf16> to vector<8x64xbf16>
    %c7_126 = arith.constant 7 : index
    %c0_127 = arith.constant 0 : index
    %c0_128 = arith.constant 0 : index
    %221 = vector.load %arg6[%c7_126, %c0_127, %c0_128] : memref<9x1x64xbf16, #tpu.memory_space<vmem>>, vector<1x1x64xbf16>
    %222 = vector.shape_cast %221 : vector<1x1x64xbf16> to vector<1x64xbf16>
    %223 = vector.broadcast %222 : vector<1x64xbf16> to vector<8x64xbf16>
    %224 = arith.mulf %220, %223 : vector<8x64xbf16>
    %225 = vector.extract_strided_slice %184 {offsets = [0, 18], sizes = [8, 64], strides = [1, 1]} : vector<8x82xbf16> to vector<8x64xbf16>
    %c8_129 = arith.constant 8 : index
    %c0_130 = arith.constant 0 : index
    %c0_131 = arith.constant 0 : index
    %226 = vector.load %arg6[%c8_129, %c0_130, %c0_131] : memref<9x1x64xbf16, #tpu.memory_space<vmem>>, vector<1x1x64xbf16>
    %227 = vector.shape_cast %226 : vector<1x1x64xbf16> to vector<1x64xbf16>
    %228 = vector.broadcast %227 : vector<1x64xbf16> to vector<8x64xbf16>
    %229 = arith.mulf %225, %228 : vector<8x64xbf16>
    %230 = tpu.concatenate %189, %194, %199, %204, %209, %214, %219, %224, %229 in 0 : vector<8x64xbf16>, vector<8x64xbf16>, vector<8x64xbf16>, vector<8x64xbf16>, vector<8x64xbf16>, vector<8x64xbf16>, vector<8x64xbf16>, vector<8x64xbf16>, vector<8x64xbf16> -> vector<72x64xbf16>
    %c0_132 = arith.constant 0 : index
    %c0_133 = arith.constant 0 : index
    %231 = vector.load %arg4[%c0_132, %c0_133] : memref<8x72xbf16, #tpu.memory_space<vmem>>, vector<8x72xbf16>
    %cst_134 = arith.constant dense<0.000000e+00> : vector<8x64xf32>
    %232 = tpu.matmul %231, %230, %cst_134 {dimension_numbers = #tpu.dot_dimension_numbers<[1], [0], [0], [1], [0, 0, 1, 1], [], []>} : vector<8x72xbf16>, vector<72x64xbf16>, vector<8x64xf32> -> vector<8x64xf32>
    %c0_135 = arith.constant 0 : index
    %c0_136 = arith.constant 0 : index
    %233 = vector.load %arg5[%c0_135, %c0_136] : memref<8x1xf32, #tpu.memory_space<vmem>>, vector<8x1xf32>
    %234 = vector.broadcast %233 : vector<8x1xf32> to vector<8x64xf32>
    %235 = arith.addf %232, %234 : vector<8x64xf32>
    %cst_137 = arith.constant 0.000000e+00 : f32
    %236 = vector.broadcast %cst_137 : f32 to vector<8x64xf32>
    %237 = arith.cmpf ogt, %235, %236 : vector<8x64xf32>
    %cst_138 = arith.constant 2.000000e-01 : f32
    %238 = vector.broadcast %cst_138 : f32 to vector<8x64xf32>
    %239 = arith.mulf %238, %235 : vector<8x64xf32>
    %240 = arith.select %237, %235, %239 : vector<8x64xi1>, vector<8x64xf32>
    %c1_139 = arith.constant 1 : index
    %c0_140 = arith.constant 0 : index
    %c0_141 = arith.constant 0 : index
    %241 = vector.load %arg7[%c1_139, %c0_140, %c0_141] : memref<2x8x64xf32, #tpu.memory_space<vmem>>, vector<1x8x64xf32>
    %242 = vector.shape_cast %241 : vector<1x8x64xf32> to vector<8x64xf32>
    %243 = vector.shape_cast %240 : vector<8x64xf32> to vector<1x8x64xf32>
    tpu.vector_store %arg7[%c1_139, %c0_140, %c0_141], %243 {strides = array<i32>} : memref<2x8x64xf32, #tpu.memory_space<vmem>>, vector<1x8x64xf32>,
    return
  }
  func.func @transform_0(%arg0: i32) -> (i32, i32, i32) {
    %c0_i32 = arith.constant 0 : i32
    %c0_i32_0 = arith.constant 0 : i32
    %c0_i32_1 = arith.constant 0 : i32
    return %arg0, %c0_i32, %c0_i32_0 : i32, i32, i32
  }
  func.func @transform_1(%arg0: i32) -> (i32, i32) {
    %c0_i32 = arith.constant 0 : i32
    %c0_i32_0 = arith.constant 0 : i32
    %c0_i32_1 = arith.constant 0 : i32
    return %c0_i32, %c0_i32_0 : i32, i32
  }
  func.func @transform_2(%arg0: i32) -> (i32, i32) {
    %c0_i32 = arith.constant 0 : i32
    %c0_i32_0 = arith.constant 0 : i32
    %c0_i32_1 = arith.constant 0 : i32
    return %c0_i32, %c0_i32_0 : i32, i32
  }
  func.func @transform_3(%arg0: i32) -> (i32, i32) {
    %c0_i32 = arith.constant 0 : i32
    %c0_i32_0 = arith.constant 0 : i32
    %c0_i32_1 = arith.constant 0 : i32
    return %c0_i32, %c0_i32_0 : i32, i32
  }
  func.func @transform_4(%arg0: i32) -> (i32, i32) {
    %c0_i32 = arith.constant 0 : i32
    %c0_i32_0 = arith.constant 0 : i32
    %c0_i32_1 = arith.constant 0 : i32
    return %c0_i32, %c0_i32_0 : i32, i32
  }
  func.func @transform_5(%arg0: i32) -> (i32, i32, i32) {
    %c0_i32 = arith.constant 0 : i32
    %c0_i32_0 = arith.constant 0 : i32
    %c0_i32_1 = arith.constant 0 : i32
    %c0_i32_2 = arith.constant 0 : i32
    return %c0_i32, %c0_i32_0, %c0_i32_1 : i32, i32, i32
  }
  func.func @transform_6(%arg0: i32) -> (i32, i32, i32) {
    %c0_i32 = arith.constant 0 : i32
    %c0_i32_0 = arith.constant 0 : i32
    %c0_i32_1 = arith.constant 0 : i32
    return %arg0, %c0_i32, %c0_i32_0 : i32, i32, i32
  }
}

</mosaic_0001>

<bundles_post_ra>
// kernel: tpu_custom_call.1
= control target key start
LH: loop header
LB: loop body
LE: loop exit
PB: predicated region body
PF: predicated region fallthrough
CT: control target
= control target key end

     0   :  { %v47_v1 = vlaneseq  ;;  %s894_s23 = smov 9   ;;  %s895_s12 = smov 2   ;;  %s1269_s0 = inlined_call_operand.vmem [shape: bf16[2,4,64], index: 0, kind: input, shape index: {}]   ;;  %s1270_s1 = inlined_call_operand.vmem [shape: bf16[8,36], index: 1, kind: input, shape index: {}]   ;;  %s1271_s2 = inlined_call_operand.vmem [shape: f32[8,1], index: 2, kind: input, shape index: {}]   ;;  %s1272_s3 = inlined_call_operand.vmem [shape: bf16[8,72], index: 3, kind: input, shape index: {}]   ;;  %s1273_s4 = inlined_call_operand.vmem [shape: f32[8,1], index: 4, kind: input, shape index: {}]   ;;  %s1274_s5 = inlined_call_operand.vmem [shape: bf16[9,1,64], index: 5, kind: input, shape index: {}]   ;;  %s1275_s6 = inlined_call_operand.hbm [shape: f32[2,8,64], index: 6, kind: output, shape index: {}]  }
   0x1   :  { %v756_v0 = vld.sshfl [vmem:[%s1269_s0] sm:$0x3 pattern:$0x76325410]  ;;  %v758_v2 = vld [vmem:[%s1274_s5 + $0x2] sm:$0x1] }
   0x2   :  { %34 = vrot.lane.b32.xlu0 %v756_v0, %s894_s23  ;;  %v757_v3 = vld [vmem:[%s1274_s5 + $0x1] sm:$0x1]  ;;  %v48_v4 = vshrl.u32 %v47_v1, 7  ;;  %v69_v5 = vpack.i.b16 %v758_v2, %v758_v2  ;;  %v759_v7 = vld [vmem:[%s1274_s5 + $0x3] sm:$0x1]  ;;  %s896_s13 = smov 1  }
   0x3   :  { %v55_v6 = vpack.i.b16 %v757_v3, %v757_v3  ;;  %v761_v8 = vld [vmem:[%s1274_s5 + $0x5] sm:$0x1]  ;;  %v83_v10 = vpack.i.b16 %v759_v7, %v759_v7  ;;  %v762_v12 = vld [vmem:[%s1274_s5 + $0x6] sm:$0x1]  ;;  %v760_v13 = vld [vmem:[%s1274_s5 + $0x4] sm:$0x1] }
   0x4   :  { %v966_v9 = vsub.s32 0, %v48_v4  ;;  %v111_v11 = vpack.i.b16 %v761_v8, %v761_v8  ;;  %v125_v16 = vpack.i.b16 %v762_v12, %v762_v12  ;;  %v97_v19 = vpack.i.b16 %v760_v13, %v760_v13  ;;  %v763_v20 = vld [vmem:[%s1274_s5 + $0x7] sm:$0x1]  ;;  %v764_v21 = vld [vmem:[%s1274_s5 + $0x8] sm:$0x1] }
   0x6   :  { %v74_v14 = vrot.slane %v69_v5, %v966_v9  ;;  %v60_v15 = vrot.slane %v55_v6, %v966_v9  ;;  %v88_v17 = vrot.slane %v83_v10, %v966_v9  ;;  %v116_v18 = vrot.slane %v111_v11, %v966_v9 }
   0x8   :  { %76 = vrot.lane.b32.xlu1 %v74_v14, %s895_s12  ;;  %62 = vrot.lane.b32.xlu0 %v60_v15, %s896_s13 }
   0x9   :  { %11 = vsyncpa [#allocation3], 0  ;;  %v139_v22 = vpack.i.b16 %v763_v20, %v763_v20  ;;  %s897_s18 = smov 8   ;;  %s898_s19 = smov 10   ;;  %v130_v23 = vrot.slane %v125_v16, %v966_v9  ;;  %v102_v24 = vrot.slane %v97_v19, %v966_v9  ;;  %v153_v25 = vpack.i.b16 %v764_v21, %v764_v21  ;;  %v769_v26 = vld [vmem:[%s1274_s5 + $0x1] sm:$0x1] }
   0xa   :  { %s899_s22 = smov 16   ;;  %v417_v29 = vpack.i.b16 %v769_v26, %v769_v26  ;;  %v770_v30 = vld [vmem:[%s1274_s5 + $0x2] sm:$0x1]  ;;  %v771_v31 = vld [vmem:[%s1274_s5 + $0x3] sm:$0x1]  ;;  %s900_s28 = smov 17  }
   0xb   :  { %v144_v27 = vrot.slane %v139_v22, %v966_v9  ;;  %v158_v28 = vrot.slane %v153_v25, %v966_v9  ;;  %s901_s29 = smov 18   ;;  %v430_v33 = vpack.i.b16 %v770_v30, %v770_v30  ;;  %v443_v34 = vpack.i.b16 %v771_v31, %v771_v31  ;;  %v773_v35 = vld [vmem:[%s1274_s5 + $0x5] sm:$0x1]  ;;  %v774_v37 = vld [vmem:[%s1274_s5 + $0x6] sm:$0x1]  ;;  %s905_s20 = smov 119  }
   0xc   :  { %90 = vrot.lane.b32.xlu1 %v88_v17, %s897_s18  ;;  %118 = vrot.lane.b32.xlu0 %v116_v18, %s898_s19  ;;  %v422_v32 = vrot.slane %v417_v29, %v966_v9  ;;  %v768_v36 = vld.sshfl [vmem:[%s1269_s0 + $0x2] sm:$0x3 pattern:$0x76325410]  ;;  %v469_v38 = vpack.i.b16 %v773_v35, %v773_v35  ;;  %v482_v41 = vpack.i.b16 %v774_v37, %v774_v37  ;;  %v772_v42 = vld [vmem:[%s1274_s5 + $0x4] sm:$0x1] }
   0xd   :  { %v435_v39 = vrot.slane %v430_v33, %v966_v9  ;;  %v448_v40 = vrot.slane %v443_v34, %v966_v9  ;;  %v775_v43 = vld [vmem:[%s1274_s5 + $0x7] sm:$0x1]  ;;  %v456_v44 = vpack.i.b16 %v772_v42, %v772_v42  ;;  %v776_v48 = vld [vmem:[%s1274_s5 + $0x8] sm:$0x1]  ;;  %vm36_vm0 = vcmask 72704   ;;  %s906_s21 = smov 118  }
   0xe   :  { %v474_v45 = vrot.slane %v469_v38, %v966_v9  ;;  %v487_v46 = vrot.slane %v482_v41, %v966_v9  ;;  %v495_v47 = vpack.i.b16 %v775_v43, %v775_v43  ;;  %v508_v51 = vpack.i.b16 %v776_v48, %v776_v48  ;;  %s909_s24 = smov 111   ;;  %s910_s25 = smov 112   ;;  %v43_v43 = vld [vmem:[%s1274_s5] sm:$0x1] }
   0xf   :  { %v461_v49 = vrot.slane %v456_v44, %v966_v9  ;;  %vm40_vm1 = vcmask 596992   ;;  %v902_v60 = vmov 0.0   ;;  %vm907_vm2 = vmmov 0   ;;  %s911_s26 = smov 110   ;;  %s913_s16 = smov [#allocation2]  }
  0x10   :  { %132 = vrot.lane.b32.xlu1 %v130_v23, %s899_s22  ;;  %104 = vrot.lane.b32.xlu0 %v102_v24, %s894_s23  ;;  %v500_v50 = vrot.slane %v495_v47, %v966_v9  ;;  %v513_v52 = vrot.slane %v508_v51, %v966_v9  ;;  %v912_v38 = vmov 0   ;;  %v45_v44 = vpack.i.b16 %v43_v43, %v43_v43 }
  0x11   :  { %799 = vmatprep.subr.bf16.mxu0 %v902_v60  ;;  %809 = vmatprep.subr.bf16.mxu1 %v902_v60  ;;  %vm194_vm3 = vcmask 1041408   ;;  %vm198_vm4 = vcmask 1043456   ;;  %vm201_vm5 = vcmask 1045504   ;;  %vm220_vm6 = vcmask 293888  }
  0x12   :  { %805 = vmatprep.mubr.msk.bf16.mxu0 %vm907_vm2, %v902_v60  ;;  %819 = vmatprep.mubr.msk.bf16.mxu1 %vm907_vm2, %v902_v60  ;;  %vm338_vm9 = vcmask 588800   ;;  %vm388_vm11 = vcmask 523264  }
  0x13   :  { %868 = vset.pattern.permute.xlu0 %v912_v38  ;;  %869 = vset.pattern.permute.xlu1 %v912_v38 }
  0x14   :  { %146 = vrot.lane.b32.xlu1 %v144_v27, %s900_s28  ;;  %160 = vrot.lane.b32.xlu0 %v158_v28, %s901_s29 }
  0x18   :  { %400 = vrot.lane.b32.xlu1 %v768_v36, %s894_s23  ;;  %424 = vrot.lane.b32.xlu0 %v422_v32, %s896_s13 }
  0x1c   :  { %437 = vrot.lane.b32.xlu1 %v435_v39, %s895_s12  ;;  %450 = vrot.lane.b32.xlu0 %v448_v40, %s897_s18  ;;  %s903_s12 = smov 127   ;;  %v214_v39 = vld [vmem:[%s1271_s2] sm:$0xff] }
  0x20   :  { %476 = vrot.lane.b32.xlu1 %v474_v45, %s898_s19  ;;  %489 = vrot.lane.b32.xlu0 %v487_v46, %s899_s22  ;;  %s904_s19 = smov 120   ;;  %s908_s22 = smov 126   ;;  %v1141_v46 = vrot.slane %v45_v44, %v966_v9 }
  0x24   :  { %463 = vrot.lane.b32.xlu1 %v461_v49, %s894_s23  ;;  %502 = vrot.lane.b32.xlu0 %v500_v50, %s900_s28 }
  0x28   :  { %515 = vrot.lane.b32.xlu1 %v513_v52, %s901_s29 }
  0x74   :  { %v35_v53 = vpop.permute.xlu0 %34 }
  0x75   :  { %v39_v54 = vsel %vm36_vm0, 0, %v35_v53 }
  0x76   :  { %v1042_v55 = vsel %vm40_vm1, %v39_v54, 0 }
  0x77   :  { %v51_v49 = vmul.bf16 %v1141_v46, %v1042_v55 }
  0x7a   :  { %v1044_v56 = vpop.permute.xlu1 %76  ;;  %v1046_v57 = vpop.permute.xlu0 %62 }
  0x7b   :  { %v65_v58 = vmul.bf16 %v1046_v57, %v1042_v55  ;;  %v79_v4 = vmul.bf16 %v1044_v56, %v1042_v55 }
  0x7d   :  { %v165_v59 = vrot.slane %v65_v58, 6  ;;  %v169_v10 = vrot.slane %v79_v4, 4 }
  0x7e   :  { %v1052_v61 = vpop.permute.xlu1 %90  ;;  %v1054_v62 = vpop.permute.xlu0 %118 }
  0x7f   :  { %v93_v63 = vmul.bf16 %v1052_v61, %v1042_v55  ;;  %166 = vrot.lane.b32.xlu0 %v165_v59, %s903_s12  ;;  %v121_v1 = vmul.bf16 %v1054_v62, %v1042_v55 }
  0x81   :  { %v173_v0 = vrot.slane %v93_v63, 2  ;;  %v180_v6 = vrot.slane %v121_v1, 6  ;;  %v406_v1 = vld [vmem:[%s1274_s5] sm:$0x1] }
  0x82   :  { %v1061_v2 = vpop.permute.xlu1 %132  ;;  %v1063_v3 = vpop.permute.xlu0 %104 }
  0x83   :  { %v107_v5 = vmul.bf16 %v1063_v3, %v1042_v55  ;;  %174 = vrot.lane.b32.xlu0 %v173_v0, %s904_s19  ;;  %v135_v11 = vmul.bf16 %v1061_v2, %v1042_v55 }
  0x85   :  { %177 = vrot.lane.b32.xlu1 %v107_v5, %s905_s20  ;;  %v184_v16 = vrot.slane %v135_v11, 4  ;;  %v213_v11 = vld [vmem:[%s1270_s1] sm:$0xf] }
  0x86   :  { %v1071_v7 = vpop.permute.xlu1 %146  ;;  %v1073_v8 = vpop.permute.xlu0 %160 }
  0x87   :  { %v149_v12 = vmul.bf16 %v1071_v7, %v1042_v55  ;;  %181 = vrot.lane.b32.xlu0 %v180_v6, %s906_s21  ;;  %v163_v22 = vmul.bf16 %v1073_v8, %v1042_v55 }
  0x89   :  { %v188_v13 = vrot.slane %v149_v12, 2  ;;  %170 = vrot.lane.b32.xlu1 %v169_v10, %s908_s22  ;;  %v408_v10 = vpack.i.b16 %v406_v1, %v406_v1 }
  0x8a   :  { %v401_v14 = vpop.permute.xlu1 %400  ;;  %v1085_v15 = vpop.permute.xlu0 %424 }
  0x8b   :  { %v403_v17 = vsel %vm36_vm0, 0, %v401_v14  ;;  %189 = vrot.lane.b32.xlu0 %v188_v13, %s909_s24  ;;  %v1162_v13 = vrot.slane %v408_v10, %v966_v9 }
  0x8c   :  { %v1090_v18 = vsel %vm40_vm1, %v403_v17, 0 }
  0x8d   :  { %v427_v19 = vmul.bf16 %v1085_v15, %v1090_v18  ;;  %185 = vrot.lane.b32.xlu1 %v184_v16, %s910_s25  ;;  %v414_v16 = vmul.bf16 %v1162_v13, %v1090_v18 }
  0x8e   :  { %v1095_v20 = vpop.permute.xlu1 %437  ;;  %v1097_v21 = vpop.permute.xlu0 %450 }
  0x8f   :  { %v520_v23 = vrot.slane %v427_v19, 6  ;;  %v453_v24 = vmul.bf16 %v1097_v21, %v1090_v18  ;;  %v440_v31 = vmul.bf16 %v1095_v20, %v1090_v18 }
  0x91   :  { %192 = vrot.lane.b32.xlu1 %v163_v22, %s911_s26  ;;  %521 = vrot.lane.b32.xlu0 %v520_v23, %s903_s12  ;;  %v528_v27 = vrot.slane %v453_v24, 2  ;;  %v524_v35 = vrot.slane %v440_v31, 4 }
  0x92   :  { %v1105_v25 = vpop.permute.xlu1 %476  ;;  %v1107_v26 = vpop.permute.xlu0 %489 }
  0x93   :  { %v479_v28 = vmul.bf16 %v1105_v25, %v1090_v18  ;;  %v492_v36 = vmul.bf16 %v1107_v26, %v1090_v18 }
  0x95   :  { %529 = vrot.lane.b32.xlu0 %v528_v27, %s904_s19  ;;  %v535_v32 = vrot.slane %v479_v28, 6  ;;  %v539_v40 = vrot.slane %v492_v36, 4 }
  0x96   :  { %v1112_v29 = vpop.permute.xlu1 %463  ;;  %v1114_v30 = vpop.permute.xlu0 %502 }
  0x97   :  { %v466_v33 = vmul.bf16 %v1112_v29, %v1090_v18  ;;  %v505_v34 = vmul.bf16 %v1114_v30, %v1090_v18 }
  0x99   :  { %532 = vrot.lane.b32.xlu1 %v466_v33, %s905_s20  ;;  %536 = vrot.lane.b32.xlu0 %v535_v32, %s906_s21  ;;  %v543_v37 = vrot.slane %v505_v34, 2  ;;  %v565_v34 = vld [vmem:[%s1270_s1] sm:$0xf] }
  0x9a   :  { %v1131_v41 = vpop.permute.xlu1 %515 }
  0x9b   :  { %v518_v42 = vmul.bf16 %v1131_v41, %v1090_v18 }
  0x9d   :  { %525 = vrot.lane.b32.xlu1 %v524_v35, %s908_s22  ;;  %544 = vrot.lane.b32.xlu0 %v543_v37, %s909_s24 }
  0xa1   :  { %540 = vrot.lane.b32.xlu1 %v539_v40, %s910_s25  ;;  %217 = vperm.xlu0 %868, %v214_v39  }
  0xa5   :  { %547 = vrot.lane.b32.xlu1 %v518_v42, %s911_s26 }
  0xa9   :  { %569 = vperm.xlu1 %869, %v214_v39  }
  0xf1   :  { %v167_v45 = vpop.permute.xlu0 %166 }
  0xf2   :  { %v197_v51 = vsel %vm194_vm3, %v51_v49, %v167_v45 }
  0xf5   :  { %v175_v47 = vpop.permute.xlu0 %174 }
  0xf7   :  { %v178_v48 = vpop.permute.xlu1 %177 }
  0xf9   :  { %v182_v50 = vpop.permute.xlu0 %181 }
  0xfa   :  { %v207_v58 = vsel %vm194_vm3, %v178_v48, %v182_v50 }
  0xfb   :  { %v171_v52 = vpop.permute.xlu1 %170 }
  0xfc   :  { %v200_v53 = vsel %vm198_vm4, %v197_v51, %v171_v52 }
  0xfd   :  { %v203_v54 = vsel %vm201_vm5, %v200_v53, %v175_v47  ;;  %v190_v59 = vpop.permute.xlu0 %189 }
  0xfe   :  { %800 = vmatpush3.bf16.msra.mxu0 %v203_v54 }
  0xff   :  { %v186_v63 = vpop.permute.xlu1 %185  ;;  %801 = vmatprep.subr.bf16.mxu0 %v902_v60 }
 0x100   :  { %v209_v0 = vsel %vm198_vm4, %v207_v58, %v186_v63 }
 0x101   :  { %v211_v55 = vsel %vm201_vm5, %v209_v0, %v190_v59 }
 0x102   :  { %802 = vmatpush3.bf16.msra.mxu0 %v211_v55 }
 0x103   :  { %v193_v4 = vpop.permute.xlu1 %192  ;;  %v522_v5 = vpop.permute.xlu0 %521  ;;  %803 = vmatprep.subr.bf16.mxu0 %v902_v60 }
 0x104   :  { %v225_v6 = vsel %vm194_vm3, %v193_v4, 0  ;;  %v551_v19 = vsel %vm194_vm3, %v414_v16, %v522_v5 }
 0x106   :  { %804 = vmatpush3.bf16.msra.mxu0 %v225_v6 }
 0x107   :  { %823 = vmatprep.subr.bf16.mxu0 %v902_v60  ;;  %v530_v12 = vpop.permute.xlu0 %529 }
 0x109   :  { %806 = vmatmul.mubr.msk.bf16.vlgmr.msra.gmra.mrb[0].mxu0 %vm220_vm6, %v213_v11 }
 0x10a   :  { %829 = vmatprep.mubr.msk.bf16.mxu0 %vm907_vm2, %v902_v60 }
 0x10b   :  { %v533_v14 = vpop.permute.xlu1 %532  ;;  %v537_v17 = vpop.permute.xlu0 %536 }
 0x10c   :  { %v559_v9 = vsel %vm194_vm3, %v533_v14, %v537_v17 }
 0x10f   :  { %v526_v22 = vpop.permute.xlu1 %525  ;;  %v545_v28 = vpop.permute.xlu0 %544 }
 0x110   :  { %v553_v23 = vsel %vm198_vm4, %v551_v19, %v526_v22 }
 0x111   :  { %v555_v24 = vsel %vm201_vm5, %v553_v23, %v530_v12 }
 0x112   :  { %824 = vmatpush3.bf16.msra.mxu0 %v555_v24 }
 0x113   :  { %v541_v27 = vpop.permute.xlu1 %540  ;;  %825 = vmatprep.subr.bf16.mxu0 %v902_v60 }
 0x114   :  { %v561_v31 = vsel %vm198_vm4, %v559_v9, %v541_v27 }
 0x115   :  { %v563_v32 = vsel %vm201_vm5, %v561_v31, %v545_v28 }
 0x116   :  { %826 = vmatpush3.bf16.msra.mxu0 %v563_v32 }
 0x117   :  { %v548_v18 = vpop.permute.xlu1 %547  ;;  %827 = vmatprep.subr.bf16.mxu0 %v902_v60 }
 0x118   :  { %v576_v33 = vsel %vm194_vm3, %v548_v18, 0 }
 0x11a   :  { %828 = vmatpush3.bf16.msra.mxu0 %v576_v33 }
 0x11d   :  { %830 = vmatmul.mubr.msk.bf16.vlgmr.msra.gmra.mrb[4].mxu0 %vm220_vm6, %v565_v34 }
 0x120   :  { %v218_v35 = vpop.permute.xlu0 %217 }
 0x128   :  { %v570_v45 = vpop.permute.xlu1 %569 }
 0x1dc   :  { %v261_v36 = vpop.f32.mrb[0].mxu0 }
 0x1dd   :  { %v262_v37 = vadd.f32 %v261_v36, %v218_v35  ;;  %v807_v38 = vpop.f32.mrb[1].mxu0 }
 0x1de   :  { %v264_v39 = vpop.f32.mrb[2].mxu0 }
 0x1df   :  { %vm267_vm7 = vcmp.gt.f32.partialorder %v262_v37, 0.0  ;;  %v268_v40 = vmul.f32 0.2, %v262_v37  ;;  %v808_v42 = vpop.f32.mrb[3].mxu0 }
 0x1e1   :  { %v269_v43 = vsel %vm267_vm7, %v262_v37, %v268_v40  ;;  %v331_v37 = vld [vmem:[%s1272_s3] sm:$0xf] }
 0x1e2   :  { %v270_v44 = vpack.c.bf16 %v269_v43, %v269_v43 }
 0x1e4   :  { %272 = vrot.lane.b32.xlu1 %v270_v44, %s894_s23 }
 0x1f0   :  { %v612_v47 = vpop.f32.mrb[4].mxu0 }
 0x1f1   :  { %v613_v48 = vadd.f32 %v612_v47, %v570_v45  ;;  %v831_v49 = vpop.f32.mrb[5].mxu0 }
 0x1f2   :  { %v615_v50 = vpop.f32.mrb[6].mxu0 }
 0x1f3   :  { %vm618_vm8 = vcmp.gt.f32.partialorder %v613_v48, 0.0  ;;  %v619_v51 = vmul.f32 0.2, %v613_v48  ;;  %v832_v52 = vpop.f32.mrb[7].mxu0 }
 0x1f4   :  { %v682_v52 = vld [vmem:[%s1272_s3] sm:$0xf]  ;;  %s745_s3 = sshll.u32 %s913_s16, 4  ;;  %s746_s3 = int_to_ptr.vmem [resolvable:$true] %s745_s3 }
 0x1f5   :  { %v620_v53 = vsel %vm618_vm8, %v613_v48, %v619_v51  ;;  %s870_s0 = scalar_lea.vmem %s746_s3, 256  ;;  %p875_p1 = scmp.lt.s32.totalorder %s746_s3, %s746_s3 }
 0x1f6   :  { %v621_v54 = vpack.c.bf16 %v620_v53, %v620_v53  ;;  %p871_p0 = scmp.ne.s32.totalorder %s746_s3, %s870_s0  ;;  %p876_p2 = scmp.lt.s32.totalorder %s870_s0, %s870_s0 }
 0x1f8   :  { %623 = vrot.lane.b32.xlu0 %v621_v54, %s894_s23  ;;  %p877_p3 = por %p876_p2, %p875_p1 }
 0x1fa   :  { %p878_p4 = pnand %p877_p3, %p871_p0 }
 0x256   :  { %v273_v58 = vpop.permute.xlu1 %272 }
 0x257   :  { %v275_v59 = vsel %vm36_vm0, 0, %v273_v58 }
 0x258   :  { %v276_v63 = vsel %vm40_vm1, %v275_v59, 0 }
 0x259   :  { %v280_v0 = vmul.bf16 %v276_v63, %v1044_v56  ;;  %v279_v55 = vmul.bf16 %v276_v63, %v1046_v57  ;;  %v281_v4 = vmul.bf16 %v276_v63, %v1052_v61  ;;  %v282_v5 = vmul.bf16 %v276_v63, %v1063_v3 }
 0x25a   :  { %v283_v10 = vmul.bf16 %v276_v63, %v1054_v62  ;;  %v284_v56 = vmul.bf16 %v276_v63, %v1061_v2  ;;  %v285_v11 = vmul.bf16 %v276_v63, %v1071_v7  ;;  %v286_v61 = vmul.bf16 %v276_v63, %v1073_v8 }
 0x25b   :  { %292 = vrot.lane.b32.xlu0 %v280_v0, %s908_s22  ;;  %v288_v1 = vrot.slane %v279_v55, 4  ;;  %v295_v6 = vrot.slane %v281_v4, 4  ;;  %v278_v24 = vmul.bf16 %v276_v63, %v1141_v46 }
 0x25c   :  { %v302_v57 = vrot.slane %v283_v10, 4  ;;  %v309_v3 = vrot.slane %v285_v11, 4 }
 0x25d   :  { %289 = vrot.lane.b32.xlu1 %v288_v1, %s903_s12 }
 0x25f   :  { %299 = vrot.lane.b32.xlu0 %v282_v5, %s905_s20 }
 0x261   :  { %296 = vrot.lane.b32.xlu1 %v295_v6, %s904_s19 }
 0x263   :  { %306 = vrot.lane.b32.xlu0 %v284_v56, %s910_s25 }
 0x265   :  { %303 = vrot.lane.b32.xlu1 %v302_v57, %s906_s21 }
 0x267   :  { %313 = vrot.lane.b32.xlu0 %v286_v61, %s911_s26 }
 0x269   :  { %310 = vrot.lane.b32.xlu1 %v309_v3, %s909_s24 }
 0x26a   :  { %v624_v12 = vpop.permute.xlu0 %623 }
 0x26b   :  { %v626_v62 = vsel %vm36_vm0, 0, %v624_v12 }
 0x26c   :  { %v627_v14 = vsel %vm40_vm1, %v626_v62, 0 }
 0x26d   :  { %v631_v2 = vmul.bf16 %v627_v14, %v1095_v20  ;;  %v630_v16 = vmul.bf16 %v627_v14, %v1085_v15  ;;  %v632_v17 = vmul.bf16 %v627_v14, %v1097_v21  ;;  %v633_v8 = vmul.bf16 %v627_v14, %v1112_v29 }
 0x26e   :  { %v634_v22 = vmul.bf16 %v627_v14, %v1105_v25  ;;  %v635_v20 = vmul.bf16 %v627_v14, %v1107_v26  ;;  %v636_v23 = vmul.bf16 %v627_v14, %v1114_v30  ;;  %v637_v21 = vmul.bf16 %v627_v14, %v1131_v41  ;;  %v683_v25 = vld [vmem:[%s1273_s4] sm:$0xff] }
 0x26f   :  { %643 = vrot.lane.b32.xlu0 %v631_v2, %s908_s22  ;;  %v639_v7 = vrot.slane %v630_v16, 4  ;;  %v646_v19 = vrot.slane %v632_v17, 4  ;;  %v629_v38 = vmul.bf16 %v627_v14, %v1162_v13 }
 0x270   :  { %v653_v15 = vrot.slane %v634_v22, 4  ;;  %v660_v29 = vrot.slane %v636_v23, 4 }
 0x271   :  { %640 = vrot.lane.b32.xlu1 %v639_v7, %s903_s12 }
 0x273   :  { %650 = vrot.lane.b32.xlu0 %v633_v8, %s905_s20 }
 0x275   :  { %647 = vrot.lane.b32.xlu1 %v646_v19, %s904_s19 }
 0x277   :  { %657 = vrot.lane.b32.xlu0 %v635_v20, %s910_s25 }
 0x279   :  { %654 = vrot.lane.b32.xlu1 %v653_v15, %s906_s21 }
 0x27b   :  { %664 = vrot.lane.b32.xlu0 %v637_v21, %s911_s26 }
 0x27d   :  { %661 = vrot.lane.b32.xlu1 %v660_v29, %s909_s24 }
 0x27f   :  { %686 = vperm.xlu0 %868, %v683_v25  }
 0x281   :  { %335 = vperm.xlu1 %869, %v683_v25  }
 0x2cd   :  { %v293_v26 = vpop.permute.xlu0 %292 }
 0x2cf   :  { %v290_v9 = vpop.permute.xlu1 %289 }
 0x2d0   :  { %v317_v30 = vsel %vm198_vm4, %v278_v24, %v290_v9 }
 0x2d1   :  { %810 = vmatpush3.bf16.msra.mxu1 %v317_v30  ;;  %v300_v27 = vpop.permute.xlu0 %299 }
 0x2d2   :  { %811 = vmatprep.subr.bf16.mxu1 %v902_v60 }
 0x2d3   :  { %v297_v41 = vpop.permute.xlu1 %296 }
 0x2d4   :  { %v321_v28 = vsel %vm198_vm4, %v293_v26, %v297_v41 }
 0x2d5   :  { %812 = vmatpush3.bf16.msra.mxu1 %v321_v28  ;;  %v307_v31 = vpop.permute.xlu0 %306 }
 0x2d6   :  { %813 = vmatprep.subr.bf16.mxu1 %v902_v60 }
 0x2d7   :  { %v304_v32 = vpop.permute.xlu1 %303 }
 0x2d8   :  { %v325_v18 = vsel %vm198_vm4, %v300_v27, %v304_v32 }
 0x2d9   :  { %814 = vmatpush3.bf16.msra.mxu1 %v325_v18  ;;  %v314_v34 = vpop.permute.xlu0 %313 }
 0x2da   :  { %815 = vmatprep.subr.bf16.mxu1 %v902_v60  ;;  %v343_v35 = vsel %vm198_vm4, %v314_v34, 0 }
 0x2db   :  { %v311_v46 = vpop.permute.xlu1 %310 }
 0x2dc   :  { %v329_v33 = vsel %vm198_vm4, %v307_v31, %v311_v46 }
 0x2dd   :  { %816 = vmatpush3.bf16.msra.mxu1 %v329_v33 }
 0x2de   :  { %817 = vmatprep.subr.bf16.mxu1 %v902_v60 }
 0x2e1   :  { %818 = vmatpush3.bf16.msra.mxu1 %v343_v35  ;;  %v644_v36 = vpop.permute.xlu0 %643 }
 0x2e2   :  { %833 = vmatprep.subr.bf16.mxu1 %v902_v60 }
 0x2e3   :  { %v641_v39 = vpop.permute.xlu1 %640 }
 0x2e4   :  { %v668_v40 = vsel %vm198_vm4, %v629_v38, %v641_v39  ;;  %820 = vmatmul.mubr.msk.bf16.vlgmr.msra.gmra.mrb[0].mxu1 %vm338_vm9, %v331_v37 }
 0x2e5   :  { %834 = vmatpush3.bf16.msra.mxu1 %v668_v40  ;;  %v651_v42 = vpop.permute.xlu0 %650  ;;  %843 = vmatprep.mubr.msk.bf16.mxu1 %vm907_vm2, %v902_v60 }
 0x2e6   :  { %835 = vmatprep.subr.bf16.mxu1 %v902_v60 }
 0x2e7   :  { %v648_v43 = vpop.permute.xlu1 %647 }
 0x2e8   :  { %v672_v44 = vsel %vm198_vm4, %v644_v36, %v648_v43 }
 0x2e9   :  { %836 = vmatpush3.bf16.msra.mxu1 %v672_v44  ;;  %v658_v13 = vpop.permute.xlu0 %657 }
 0x2ea   :  { %837 = vmatprep.subr.bf16.mxu1 %v902_v60 }
 0x2eb   :  { %v655_v45 = vpop.permute.xlu1 %654 }
 0x2ec   :  { %v676_v47 = vsel %vm198_vm4, %v651_v42, %v655_v45 }
 0x2ed   :  { %838 = vmatpush3.bf16.msra.mxu1 %v676_v47  ;;  %v665_v50 = vpop.permute.xlu0 %664 }
 0x2ee   :  { %839 = vmatprep.subr.bf16.mxu1 %v902_v60  ;;  %v693_v51 = vsel %vm198_vm4, %v665_v50, 0 }
 0x2ef   :  { %v662_v48 = vpop.permute.xlu1 %661 }
 0x2f0   :  { %v680_v49 = vsel %vm198_vm4, %v658_v13, %v662_v48 }
 0x2f1   :  { %840 = vmatpush3.bf16.msra.mxu1 %v680_v49 }
 0x2f2   :  { %841 = vmatprep.subr.bf16.mxu1 %v902_v60 }
 0x2f5   :  { %842 = vmatpush3.bf16.msra.mxu1 %v693_v51 }
 0x2f8   :  { %844 = vmatmul.mubr.msk.bf16.vlgmr.msra.gmra.mrb[4].mxu1 %vm338_vm9, %v682_v52 }
 0x2fe   :  { %v687_v60 = vpop.permute.xlu0 %686 }
 0x300   :  { %v336_v53 = vpop.permute.xlu1 %335 }
 0x3b7   :  { %v379_v54 = vpop.f32.mrb[0].mxu1 }
 0x3b8   :  { %v380_v58 = vadd.f32 %v379_v54, %v336_v53  ;;  %v821_v59 = vpop.f32.mrb[1].mxu1 }
 0x3b9   :  { %v382_v63 = vpop.f32.mrb[2].mxu1 }
 0x3ba   :  { %vm385_vm10 = vcmp.gt.f32.partialorder %v380_v58, 0.0  ;;  %v386_v0 = vmul.f32 0.2, %v380_v58  ;;  %v822_v55 = vpop.f32.mrb[3].mxu1 }
 0x3bc   :  { %v387_v1 = vsel %vm385_vm10, %v380_v58, %v386_v0 }
 0x3bd   :  { %389 = vst.msk [vmem:[#allocation2] sm:$0xff] %vm388_vm11, %v387_v1 }
 0x3cb   :  { %v729_v4 = vpop.f32.mrb[4].mxu1 }
 0x3cc   :  { %v730_v5 = vadd.f32 %v729_v4, %v687_v60  ;;  %v845_v6 = vpop.f32.mrb[5].mxu1 }
 0x3cd   :  { %v732_v10 = vpop.f32.mrb[6].mxu1 }
 0x3ce   :  { %vm735_vm12 = vcmp.gt.f32.partialorder %v730_v5, 0.0  ;;  %v736_v56 = vmul.f32 0.2, %v730_v5  ;;  %v846_v57 = vpop.f32.mrb[7].mxu1 }
 0x3d0   :  { %v737_v11 = vsel %vm735_vm12, %v730_v5, %v736_v56 }
 0x3d1   :  { %739 = vst.msk [vmem:[#allocation2 + $0x8] sm:$0xff] %vm388_vm11, %v737_v11 }
 0x3d2   :  { %881 = shalt.err (!%p878_p4)
}
 0x3d3   :  { %s882_s12 = scalar_lea.hbm %s1275_s6, 256 }
 0x3d4   :  { %p883_p5 = scmp.ne.s32.totalorder %s1275_s6, %s882_s12  ;;  %p886_p6 = scmp.lt.u32.totalorder %s882_s12, %s1275_s6 }
 0x3d6   :  { %p888_p7 = pnand %p886_p6, %p883_p5 }
 0x3d8   :  { %891 = shalt.err (!%p888_p7)
}
 0x3d9   :  { %s914_s24 = smov 128  }
 0x3da   :  { %751 = dma.vmem_to_hbm [thread:$0]  %s746_s3, 256, %s1275_s6, [#allocation3], %s914_s24, %s914_s24, %s897_s18  }
 0x3db   :  { %892 = dma.done.wait [#allocation3], 256  }
 0x3dc   :  { %893 = vsyncadd [#allocation3], 4294967040 }
 0x3dd   :  { %755 = vsyncpa [#allocation3], 1 }

</bundles_post_ra>
